<compile_context>
chip_gen: v5e
topology: v5e:2x2
jax: 0.10.0
libtpu: 0.0.40
codegen_flags: <defaults>
</compile_context>

<pallas_src>
import jax
import jax.numpy as jnp
from jax.experimental import pallas as pl
from jax.experimental.pallas import tpu as pltpu

BN_EPS = 1e-5
VMEM_LIMIT_BYTES = 32 * 1024 * 1024    # scoped VMEM limit; safe on v5e/v6e/v7x
BLOCK_BUDGET_BYTES = 16 * 1024 * 1024  # double-buffered block budget per pass


def _round_up(a, b):
    return -(-a // b) * b


def _largest_div_tile(hw_pad, cap):
    """Largest 128-multiple divisor of hw_pad (itself a 128 multiple) <= cap."""
    t = min(cap, hw_pad) // 128 * 128
    while t >= 128:
        if hw_pad % t == 0:
            return t
        t -= 128
    return 128


def _pick_tile(hw, per_lane_bytes, budget_bytes, max_tile):
    """Pick a lane tile (multiple of 128) plus the (possibly padded) spatial extent.

    per_lane_bytes = double-buffered VMEM bytes consumed per lane of the tile.
    """
    cap = max(128, min(max_tile,
                       (budget_bytes // max(per_lane_bytes, 1)) // 128 * 128))
    hw_pad = _round_up(hw, 128)
    if hw_pad <= cap:
        return hw_pad, hw_pad                       # one spatial tile per image
    tile = _largest_div_tile(hw_pad, cap)
    if tile * 8 >= cap:                             # big enough to amortize step overhead
        return tile, hw_pad
    # Awkward spatial size (e.g. 128 * prime): pad up to a multiple of a
    # cap-sized tile; padded columns contribute zero to the statistics.
    return cap, _round_up(hw, cap)


def conv_stats_kernel(x_ref, w_ref, y_ref, stats_ref):
    # x_ref: [1, Cin, Thw] (lane-dense), w_ref: [Cout, Cin] (resident)
    # y_ref: [1, Cout, Thw], stats_ref: [1, 1, Cout, 2]
    x = x_ref[0]                                    # native dtype -> MXU fast path
    w = w_ref[...]
    y = jnp.dot(w, x, preferred_element_type=jnp.float32)   # [Cout, Thw] f32
    y_ref[0] = y.astype(y_ref.dtype)
    # Per-channel partial BatchNorm stats from the f32 product (pre-downcast),
    # packed into a single per-step output stream.
    stats_ref[0, 0, :, 0:1] = jnp.sum(y, axis=1, keepdims=True)
    stats_ref[0, 0, :, 1:2] = jnp.sum(y * y, axis=1, keepdims=True)


def bn_relu_kernel(y_ref, scale_ref, shift_ref, o_ref):
    # y_ref: [1, Cout, Thw]; scale/shift: [Cout, 1] f32 (resident); o_ref like y.
    y = y_ref[0]
    out = y * scale_ref[...] + shift_ref[...]       # single FMA per element (f32)
    o_ref[0] = jnp.maximum(out, 0.0).astype(o_ref.dtype)


@jax.jit
def channel_reduction_block(x_nchw, conv_weight, conv_bias, bn_gamma, bn_beta):
    """x_nchw: [N, Cin, H, W]; conv_weight: [Cout, Cin] (squeezed 1x1 kernel).

    conv_bias is accepted for signature parity but intentionally unused: a
    per-channel constant added before train-mode BatchNorm cancels exactly in
    (y - mean) and leaves the variance unchanged.
    """
    del conv_bias
    N, Cin, H, W = x_nchw.shape
    Cout = conv_weight.shape[0]
    HW = H * W
    M = N * HW

    x_bytes = jnp.dtype(x_nchw.dtype).itemsize
    y_dtype = x_nchw.dtype                  # intermediate stored in input dtype
    y_bytes = jnp.dtype(y_dtype).itemsize
    out_bytes = x_bytes

    # ---- Pass-1 tiling: x + y blocks, double buffered ----
    per_lane1 = 2 * (Cin * x_bytes + Cout * y_bytes)
    hw_tile1, HW_pad = _pick_tile(HW, per_lane1, BLOCK_BUDGET_BYTES, max_tile=32768)
    T1 = HW_pad // hw_tile1

    x3 = x_nchw.reshape(N, Cin, HW)         # free reshape, no transpose
    if HW_pad != HW:
        # Zero padding -> y == 0 in padded columns (no bias), so stats unaffected.
        x3 = jnp.pad(x3, ((0, 0), (0, 0), (0, HW_pad - HW)))

    parallel2 = pltpu.CompilerParams(
        dimension_semantics=("parallel", "parallel"),
        vmem_limit_bytes=VMEM_LIMIT_BYTES,
    )

    # ---- Pass 1: 1x1 conv (MXU matmul), write y once, packed per-tile stats ----
    y_flat, stats = pl.pallas_call(
        conv_stats_kernel,
        grid=(N, T1),
        out_shape=(
            jax.ShapeDtypeStruct((N, Cout, HW_pad), y_dtype),
            jax.ShapeDtypeStruct((N, T1, Cout, 2), jnp.float32),
        ),
        in_specs=[
            pl.BlockSpec((1, Cin, hw_tile1), lambda n, t: (n, 0, t)),  # x, lane-dense
            pl.BlockSpec((Cout, Cin), lambda n, t: (0, 0)),            # weights resident
        ],
        out_specs=(
            pl.BlockSpec((1, Cout, hw_tile1), lambda n, t: (n, 0, t)),
            pl.BlockSpec((1, 1, Cout, 2), lambda n, t: (n, t, 0, 0)),
        ),
        compiler_params=parallel2,
    )(x3, conv_weight)

    # ---- Tiny XLA reduction over partial stats -> per-channel affine ----
    # TODO(synk): BatchNorm2d running_mean/running_var momentum updates (training
    # side effects) are not modeled; only the forward output is reproduced.
    s = jnp.sum(stats, axis=(0, 1))                          # [Cout, 2], f32
    mean = s[:, 0] / M
    var = jnp.maximum(s[:, 1] / M - mean * mean, 0.0)        # biased (train-mode) var
    inv_std = jax.lax.rsqrt(var + BN_EPS)
    g = bn_gamma.astype(jnp.float32)
    scale = (g * inv_std).reshape(Cout, 1)
    shift = (bn_beta.astype(jnp.float32) - mean * g * inv_std).reshape(Cout, 1)

    # ---- Pass-2 tiling: only Cout channels stream, so use a much larger tile ----
    per_lane2 = 2 * Cout * (y_bytes + out_bytes)
    cap2 = max(128, min(131072,
                        (BLOCK_BUDGET_BYTES // max(per_lane2, 1)) // 128 * 128))
    hw_tile2 = _largest_div_tile(HW_pad, cap2)
    T2 = HW_pad // hw_tile2

    # ---- Pass 2: y * scale + shift, ReLU (lane-dense FMA + max) ----
    out_flat = pl.pallas_call(
        bn_relu_kernel,
        grid=(N, T2),
        out_shape=jax.ShapeDtypeStruct((N, Cout, HW_pad), x_nchw.dtype),
        in_specs=[
            pl.BlockSpec((1, Cout, hw_tile2), lambda n, t: (n, 0, t)),
            pl.BlockSpec((Cout, 1), lambda n, t: (0, 0)),
            pl.BlockSpec((Cout, 1), lambda n, t: (0, 0)),
        ],
        out_specs=pl.BlockSpec((1, Cout, hw_tile2), lambda n, t: (n, 0, t)),
        compiler_params=parallel2,
    )(y_flat, scale, shift)

    if HW_pad != HW:
        out_flat = out_flat[:, :, :HW]
    return out_flat.reshape(N, Cout, H, W)


if __name__ == "__main__":
    # Small shapes consistent with the module: reduction_factor=12 needs
    # in_channels >= 12; use in_channels=24 -> reduced_channels=2.
    N, Cin, H, W = 2, 24, 16, 16
    reduction_factor = 12
    Cout = Cin // reduction_factor

    key = jax.random.PRNGKey(0)
    k_x, k_w, k_b, k_g, k_be = jax.random.split(key, 5)

    x = jax.random.normal(k_x, (N, Cin, H, W), dtype=jnp.float32)
    conv_weight = 0.1 * jax.random.normal(k_w, (Cout, Cin), dtype=jnp.float32)
    conv_bias = 0.05 * jax.random.normal(k_b, (Cout,), dtype=jnp.float32)
    bn_gamma = 1.0 + 0.1 * jax.random.normal(k_g, (Cout,), dtype=jnp.float32)
    bn_beta = 0.1 * jax.random.normal(k_be, (Cout,), dtype=jnp.float32)

    out = channel_reduction_block(x, conv_weight, conv_bias, bn_gamma, bn_beta)
    out = jax.block_until_ready(out)
    assert out.shape == (N, Cout, H, W), out.shape

    # Pure-JAX reference: Conv2d(1x1, with bias) -> BatchNorm2d (training batch
    # stats) -> ReLU.  The bias cancels under BN, so outputs must still match.
    y_ref = jnp.einsum("nihw,oi->nohw", x, conv_weight) + conv_bias[None, :, None, None]
    mu = jnp.mean(y_ref, axis=(0, 2, 3), keepdims=True)
    va = jnp.mean((y_ref - mu) ** 2, axis=(0, 2, 3), keepdims=True)
    ref = (y_ref - mu) * jax.lax.rsqrt(va + BN_EPS)
    ref = ref * bn_gamma[None, :, None, None] + bn_beta[None, :, None, None]
    ref = jnp.maximum(ref, 0.0)

    max_err = float(jnp.max(jnp.abs(out - ref)))
    assert jnp.allclose(out, ref, atol=1e-4, rtol=1e-4), max_err
    print("KERNEL_OK")
</pallas_src>

<mosaic_0001>
module attributes {stable_mosaic.version = 11 : i64} {
  func.func @conv_stats_kernel(%arg0: i32, %arg1: i32, %arg2: memref<1x24x256xf32, #tpu.memory_space<vmem>>, %arg3: memref<2x24xf32, #tpu.memory_space<vmem>>, %arg4: memref<1x2x256xf32, #tpu.memory_space<vmem>>, %arg5: memref<1x1x2x2xf32, #tpu.memory_space<vmem>>) attributes {dimension_semantics = [#tpu.dimension_semantics<parallel>, #tpu.dimension_semantics<parallel>], iteration_bounds = array<i64: 2, 1>, scalar_prefetch = 0 : i64, scratch_operands = 0 : i64, tpu.core_type = #tpu.core_type<tc>, window_params = [{transform_indices = @transform_0, window_bounds = array<i64: 1, 24, 256>}, {pipeline_mode = #tpu.pipeline_mode<synchronous>, transform_indices = @transform_1, window_bounds = array<i64: 2, 24>}, {transform_indices = @transform_2, window_bounds = array<i64: 1, 2, 256>}, {transform_indices = @transform_3, window_bounds = array<i64: 1, 1, 2, 2>}]} {
    %c0 = arith.constant 0 : index
    %c0_0 = arith.constant 0 : index
    %c0_1 = arith.constant 0 : index
    %0 = vector.load %arg2[%c0, %c0_0, %c0_1] : memref<1x24x256xf32, #tpu.memory_space<vmem>>, vector<1x24x256xf32>
    %1 = vector.shape_cast %0 : vector<1x24x256xf32> to vector<24x256xf32>
    %c0_2 = arith.constant 0 : index
    %c0_3 = arith.constant 0 : index
    %2 = vector.load %arg3[%c0_2, %c0_3] : memref<2x24xf32, #tpu.memory_space<vmem>>, vector<2x24xf32>
    %cst = arith.constant dense<0.000000e+00> : vector<2x256xf32>
    %3 = tpu.matmul %2, %1, %cst {dimension_numbers = #tpu.dot_dimension_numbers<[1], [0], [0], [1], [0, 0, 1, 1], [], []>} : vector<2x24xf32>, vector<24x256xf32>, vector<2x256xf32> -> vector<2x256xf32>
    %c0_4 = arith.constant 0 : index
    %c0_5 = arith.constant 0 : index
    %c0_6 = arith.constant 0 : index
    %4 = vector.load %arg4[%c0_4, %c0_5, %c0_6] : memref<1x2x256xf32, #tpu.memory_space<vmem>>, vector<1x2x256xf32>
    %5 = vector.shape_cast %4 : vector<1x2x256xf32> to vector<2x256xf32>
    %6 = vector.shape_cast %3 : vector<2x256xf32> to vector<1x2x256xf32>
    tpu.vector_store %arg4[%c0_4, %c0_5, %c0_6], %6 {strides = array<i32>} : memref<1x2x256xf32, #tpu.memory_space<vmem>>, vector<1x2x256xf32>,
    %cst_7 = arith.constant dense<0.000000e+00> : vector<2xf32>
    %7 = vector.multi_reduction <add>, %3, %cst_7 [1] : vector<2x256xf32> to vector<2xf32>
    %8 = vector.shape_cast %7 : vector<2xf32> to vector<2x1xf32>
    %c0_8 = arith.constant 0 : index
    %c0_9 = arith.constant 0 : index
    %c0_10 = arith.constant 0 : index
    %c0_11 = arith.constant 0 : index
    %9 = vector.load %arg5[%c0_8, %c0_9, %c0_10, %c0_11] : memref<1x1x2x2xf32, #tpu.memory_space<vmem>>, vector<1x1x2x1xf32>
    %10 = vector.shape_cast %9 : vector<1x1x2x1xf32> to vector<2x1xf32>
    %11 = vector.shape_cast %8 : vector<2x1xf32> to vector<1x1x2x1xf32>
    tpu.vector_store %arg5[%c0_8, %c0_9, %c0_10, %c0_11], %11 {strides = array<i32>} : memref<1x1x2x2xf32, #tpu.memory_space<vmem>>, vector<1x1x2x1xf32>,
    %12 = arith.mulf %3, %3 : vector<2x256xf32>
    %cst_12 = arith.constant dense<0.000000e+00> : vector<2xf32>
    %13 = vector.multi_reduction <add>, %12, %cst_12 [1] : vector<2x256xf32> to vector<2xf32>
    %14 = vector.shape_cast %13 : vector<2xf32> to vector<2x1xf32>
    %c0_13 = arith.constant 0 : index
    %c0_14 = arith.constant 0 : index
    %c0_15 = arith.constant 0 : index
    %c1 = arith.constant 1 : index
    %15 = vector.load %arg5[%c0_13, %c0_14, %c0_15, %c1] : memref<1x1x2x2xf32, #tpu.memory_space<vmem>>, vector<1x1x2x1xf32>
    %16 = vector.shape_cast %15 : vector<1x1x2x1xf32> to vector<2x1xf32>
    %17 = vector.shape_cast %14 : vector<2x1xf32> to vector<1x1x2x1xf32>
    tpu.vector_store %arg5[%c0_13, %c0_14, %c0_15, %c1], %17 {strides = array<i32>} : memref<1x1x2x2xf32, #tpu.memory_space<vmem>>, vector<1x1x2x1xf32>,
    return
  }
  func.func @transform_0(%arg0: i32, %arg1: i32) -> (i32, i32, i32) {
    %c0_i32 = arith.constant 0 : i32
    %c0_i32_0 = arith.constant 0 : i32
    return %arg0, %c0_i32, %arg1 : i32, i32, i32
  }
  func.func @transform_1(%arg0: i32, %arg1: i32) -> (i32, i32) {
    %c0_i32 = arith.constant 0 : i32
    %c0_i32_0 = arith.constant 0 : i32
    %c0_i32_1 = arith.constant 0 : i32
    return %c0_i32, %c0_i32_0 : i32, i32
  }
  func.func @transform_2(%arg0: i32, %arg1: i32) -> (i32, i32, i32) {
    %c0_i32 = arith.constant 0 : i32
    %c0_i32_0 = arith.constant 0 : i32
    return %arg0, %c0_i32, %arg1 : i32, i32, i32
  }
  func.func @transform_3(%arg0: i32, %arg1: i32) -> (i32, i32, i32, i32) {
    %c0_i32 = arith.constant 0 : i32
    %c0_i32_0 = arith.constant 0 : i32
    %c0_i32_1 = arith.constant 0 : i32
    return %arg0, %arg1, %c0_i32, %c0_i32_0 : i32, i32, i32, i32
  }
}

module attributes {stable_mosaic.version = 11 : i64} {
  func.func @bn_relu_kernel(%arg0: i32, %arg1: i32, %arg2: memref<1x2x256xf32, #tpu.memory_space<vmem>>, %arg3: memref<2x1xf32, #tpu.memory_space<vmem>>, %arg4: memref<2x1xf32, #tpu.memory_space<vmem>>, %arg5: memref<1x2x256xf32, #tpu.memory_space<vmem>>) attributes {dimension_semantics = [#tpu.dimension_semantics<parallel>, #tpu.dimension_semantics<parallel>], iteration_bounds = array<i64: 2, 1>, scalar_prefetch = 0 : i64, scratch_operands = 0 : i64, tpu.core_type = #tpu.core_type<tc>, window_params = [{transform_indices = @transform_0, window_bounds = array<i64: 1, 2, 256>}, {pipeline_mode = #tpu.pipeline_mode<synchronous>, transform_indices = @transform_1, window_bounds = array<i64: 2, 1>}, {pipeline_mode = #tpu.pipeline_mode<synchronous>, transform_indices = @transform_2, window_bounds = array<i64: 2, 1>}, {transform_indices = @transform_3, window_bounds = array<i64: 1, 2, 256>}]} {
    %c0 = arith.constant 0 : index
    %c0_0 = arith.constant 0 : index
    %c0_1 = arith.constant 0 : index
    %0 = vector.load %arg2[%c0, %c0_0, %c0_1] : memref<1x2x256xf32, #tpu.memory_space<vmem>>, vector<1x2x256xf32>
    %1 = vector.shape_cast %0 : vector<1x2x256xf32> to vector<2x256xf32>
    %c0_2 = arith.constant 0 : index
    %c0_3 = arith.constant 0 : index
    %2 = vector.load %arg3[%c0_2, %c0_3] : memref<2x1xf32, #tpu.memory_space<vmem>>, vector<2x1xf32>
    %3 = vector.broadcast %2 : vector<2x1xf32> to vector<2x256xf32>
    %4 = arith.mulf %1, %3 : vector<2x256xf32>
    %c0_4 = arith.constant 0 : index
    %c0_5 = arith.constant 0 : index
    %5 = vector.load %arg4[%c0_4, %c0_5] : memref<2x1xf32, #tpu.memory_space<vmem>>, vector<2x1xf32>
    %6 = vector.broadcast %5 : vector<2x1xf32> to vector<2x256xf32>
    %7 = arith.addf %4, %6 : vector<2x256xf32>
    %cst = arith.constant 0.000000e+00 : f32
    %8 = vector.broadcast %cst : f32 to vector<2x256xf32>
    %9 = arith.maximumf %7, %8 : vector<2x256xf32>
    %c0_6 = arith.constant 0 : index
    %c0_7 = arith.constant 0 : index
    %c0_8 = arith.constant 0 : index
    %10 = vector.load %arg5[%c0_6, %c0_7, %c0_8] : memref<1x2x256xf32, #tpu.memory_space<vmem>>, vector<1x2x256xf32>
    %11 = vector.shape_cast %10 : vector<1x2x256xf32> to vector<2x256xf32>
    %12 = vector.shape_cast %9 : vector<2x256xf32> to vector<1x2x256xf32>
    tpu.vector_store %arg5[%c0_6, %c0_7, %c0_8], %12 {strides = array<i32>} : memref<1x2x256xf32, #tpu.memory_space<vmem>>, vector<1x2x256xf32>,
    return
  }
  func.func @transform_0(%arg0: i32, %arg1: i32) -> (i32, i32, i32) {
    %c0_i32 = arith.constant 0 : i32
    %c0_i32_0 = arith.constant 0 : i32
    return %arg0, %c0_i32, %arg1 : i32, i32, i32
  }
  func.func @transform_1(%arg0: i32, %arg1: i32) -> (i32, i32) {
    %c0_i32 = arith.constant 0 : i32
    %c0_i32_0 = arith.constant 0 : i32
    %c0_i32_1 = arith.constant 0 : i32
    return %c0_i32, %c0_i32_0 : i32, i32
  }
  func.func @transform_2(%arg0: i32, %arg1: i32) -> (i32, i32) {
    %c0_i32 = arith.constant 0 : i32
    %c0_i32_0 = arith.constant 0 : i32
    %c0_i32_1 = arith.constant 0 : i32
    return %c0_i32, %c0_i32_0 : i32, i32
  }
  func.func @transform_3(%arg0: i32, %arg1: i32) -> (i32, i32, i32) {
    %c0_i32 = arith.constant 0 : i32
    %c0_i32_0 = arith.constant 0 : i32
    return %arg0, %c0_i32, %arg1 : i32, i32, i32
  }
}

</mosaic_0001>

<bundles_post_ra>
// kernel: channel_reduction_block.2
= control target key start
LH: loop header
LB: loop body
LE: loop exit
PB: predicated region body
PF: predicated region fallthrough
CT: control target
= control target key end

     0   :  { %s514_s12 = smov 0   ;;  %s516_s13 = smov 0   ;;  %s558_s0 = inlined_call_operand.vmem [shape: f32[2,24,256], index: 0, kind: input, shape index: {}]   ;;  %s559_s1 = inlined_call_operand.vmem [shape: f32[2,24], index: 1, kind: input, shape index: {}]   ;;  %s560_s2 = inlined_call_operand.vmem [shape: f32[2,2,256], index: 2, kind: output, shape index: {0}]   ;;  %s561_s3 = inlined_call_operand.vmem [shape: f32[2,1,2,2], index: 3, kind: output, shape index: {1}]  }
   0x1   :  { %s518_s14 = smov 0  }
   0x2 LB: > { %s26_s15 = sadd.s32 1, %s488_s13  ;;  %p435_p0 = scmp.ge.s32.totalorder %s492_s14, 1  ;;  %s492_s14 = sphi %s518_s14, %s14_s14   ;;  %s488_s13 = sphi %s516_s13, %s563_s13   ;;  %s484_s12 = sphi %s514_s12, %s562_s12  }
   0x3   : > { %p28_p1 = scmp.ge.s32.totalorder %s26_s15, 2  ;;  %p163_p2 = scmp.lt.s32.totalorder %s492_s14, 3 }
   0x5   : > { %s565_s15 = smov (%p28_p1, %s26_s15), 0  ;;  %p164_p3 = pnand %p435_p0, %p163_p2 }
   0x6   : > { %p203_p4 = scmp.lt.s32.totalorder (!%p164_p3), %s484_s12, 1 }
   0x7   : > { %167 = sbr.rel (%p164_p3) target bundleno = 276 (0x114), region = 28 }
   0xc   : > { %s567_s12 = smov (!%p203_p4, %s484_s12), 1  ;;  %v235_v6 = vld [vmem:[%s559_s1] sm:$0x3]  ;;  %vm236_vm0 = vcmask 195584   ;;  %vm283_vm1 = vcmask 1041408   ;;  %vm292_vm2 = vcmask 1024  }
   0xd   : > { %s445_s16 = smul.u32 48, %s567_s12  ;;  %s444_s22 = sshll.u32 %s567_s12, 2  ;;  %vm301_vm3 = vcmask 9224  }
   0xe   : > { %s220_s25 = scalar_lea.vmem %s560_s2, %s444_s22  ;;  %s439_s26 = sshll.u32 %s567_s12, 1 }
   0xf   : > { %s210_s19 = scalar_lea.vmem %s558_s0, %s445_s16  ;;  %s228_s29 = scalar_lea.vmem %s561_s3, %s439_s26 }
  0x10   : > { %v233_v0 = vld [vmem:[%s210_s19 + $0x20] sm:$0xff]  ;;  %v234_v1 = vld [vmem:[%s210_s19 + $0x28] sm:$0xff]  ;;  %v231_v2 = vld [vmem:[%s210_s19 + $0x10] sm:$0xff] }
  0x11   : > { %253 = vmatpush.msra.mxu0 %v233_v0  ;;  %273 = vmatpush.msra.mxu1 %v234_v1  ;;  %v232_v3 = vld [vmem:[%s210_s19 + $0x18] sm:$0xff]  ;;  %v229_v4 = vld [vmem:[%s210_s19] sm:$0xff]  ;;  %v230_v5 = vld [vmem:[%s210_s19 + $0x8] sm:$0xff] }
  0x13   : > { %254 = vmatpush.msra.mxu0 %v231_v2  ;;  %274 = vmatpush.msra.mxu1 %v232_v3 }
  0x15   : > { %255 = vmatpush.msra.mxu0 %v229_v4  ;;  %275 = vmatpush.msra.mxu1 %v230_v5 }
  0x16   : > { %440 = vmatmul.msk.f32.vlgmr.msra.gmra.mxu0 %vm236_vm0, %v235_v6  ;;  %441 = vmatmul.msk.f32.vlgmr.msra.gmra.mxu1 %vm236_vm0, %v235_v6 }
  0x93   : > { %v257_v7 = vpop.f32.mrf.mxu0  ;;  %v277_v8 = vpop.f32.mrf.mxu1 }
  0x94   : > { %v282_v9 = vrot.slane %v277_v8, 6  ;;  %v287_v10 = vsel %vm283_vm1, %v257_v7, 0.0  ;;  %v288_v11 = vsel %vm283_vm1, %v277_v8, 0.0  ;;  %v294_v14 = vmul.f32 %v257_v7, %v257_v7 }
  0x95   : > { %v289_v13 = vadd.f32 %v288_v11, %v287_v10  ;;  %v295_v15 = vmul.f32 %v277_v8, %v277_v8 }
  0x96   : > { %v284_v12 = vsel %vm283_vm1, %v257_v7, %v282_v9  ;;  %v296_v16 = vsel %vm283_vm1, %v294_v14, 0.0 }
  0x97   : > { %286 = vst [vmem:[%s220_s25] sm:$0xf] %v284_v12  ;;  %290 = vadd.xlane.f32.xlu0 %v289_v13  ;;  %v297_v17 = vsel %vm283_vm1, %v295_v15, 0.0 }
  0x98   : > { %v298_v18 = vadd.f32 %v297_v17, %v296_v16 }
  0x9f   : > { %299 = vadd.xlane.f32.xlu0 %v298_v18 }
 0x10a   : > { %v291_v19 = vpop.xlane.xlu0 %290 }
 0x10b   : > { %293 = vst.msk [vmem:[%s228_s29] sm:$0x3] %vm292_vm2, %v291_v19 }
 0x112   : > { %v300_v20 = vpop.xlane.xlu0 %299 }
 0x113   : > { %302 = vst.msk [vmem:[%s228_s29] sm:$0x3] %vm301_vm3, %v300_v20 }
 0x114 PF: > { %s14_s14 = sadd.s32 1, %s492_s14   ;;  %s562_s12 = smov %s488_s13 }
 0x115   : > { %p11_p5 = scmp.ge.s32.totalorder %s14_s14, 4   ;;  %s563_s13 = smov %s565_s15 }
 0x117   :  { %13 = sbr.rel (!%p11_p5) target bundleno = 2 (0x2), region = 70 }

// kernel: channel_reduction_block.3
= control target key start
LH: loop header
LB: loop body
LE: loop exit
PB: predicated region body
PF: predicated region fallthrough
CT: control target
= control target key end

     0   :  { %s408_s12 = smov 0   ;;  %s410_s13 = smov 0   ;;  %s447_s0 = inlined_call_operand.vmem [shape: f32[2,2,256], index: 0, kind: input, shape index: {}]   ;;  %s448_s1 = inlined_call_operand.vmem [shape: f32[2,1], index: 1, kind: input, shape index: {}]   ;;  %s449_s2 = inlined_call_operand.vmem [shape: f32[2,1], index: 2, kind: input, shape index: {}]   ;;  %s450_s3 = inlined_call_operand.vmem [shape: f32[2,2,256], index: 3, kind: output, shape index: {}]  }
   0x1   :  { %s412_s14 = smov 0  }
   0x2 LB: > { %s25_s15 = sadd.s32 1, %s380_s13  ;;  %p326_p0 = scmp.ge.s32.totalorder %s384_s14, 1  ;;  %s384_s14 = sphi %s412_s14, %s13_s14   ;;  %s380_s13 = sphi %s410_s13, %s452_s13   ;;  %s376_s12 = sphi %s408_s12, %s451_s12  }
   0x3   : > { %p27_p1 = scmp.ge.s32.totalorder %s25_s15, 2  ;;  %p158_p2 = scmp.lt.s32.totalorder %s384_s14, 3 }
   0x5   : > { %s454_s15 = smov (%p27_p1, %s25_s15), 0  ;;  %p159_p3 = pnand %p326_p0, %p158_p2 }
   0x6   : > { %p191_p4 = scmp.lt.s32.totalorder (!%p159_p3), %s376_s12, 1 }
   0x7   : > { %162 = sbr.rel (%p159_p3) target bundleno = 144 (0x90), region = 32 }
   0xc   : > { %v211_v0 = vld [vmem:[%s448_s1] sm:$0x3]  ;;  %v386_v1 = vmov 0   ;;  %s456_s12 = smov (!%p191_p4, %s376_s12), 1  ;;  %v387_v3 = vmov 269488144  }
   0xd   : > { %361 = vset.pattern.permute.xlu0 %v386_v1  ;;  %v222_v2 = vld [vmem:[%s449_s2] sm:$0x3]  ;;  %v217_v4 = vunpack.c.l.s4 %v387_v3  ;;  %s333_s20 = sshll.u32 %s456_s12, 2 }
   0xe   : > { %214 = vperm.xlu0 %361, %v211_v0   ;;  %s198_s23 = scalar_lea.vmem %s447_s0, %s333_s20  ;;  %s208_s26 = scalar_lea.vmem %s450_s3, %s333_s20 }
   0xf   : > { %v218_v6 = vunpack.c.0.s8 %v217_v4  ;;  %v210_v8 = vld [vmem:[%s198_s23] sm:$0xf] }
  0x16   : > { %225 = vperm.xlu0 %361, %v222_v2  }
  0x80   : > { %v215_v5 = vpop.permute.xlu0 %214 }
  0x81   : > { %v219_v7 = vperm.slane %v215_v5, %v218_v6 }
  0x83   : > { %v221_v10 = vmul.f32 %v219_v7, %v210_v8 }
  0x88   : > { %v226_v9 = vpop.permute.xlu0 %225 }
  0x89   : > { %v230_v11 = vperm.slane %v226_v9, %v218_v6 }
  0x8b   : > { %v232_v12 = vadd.f32 %v230_v11, %v221_v10 }
  0x8d   : > { %v233_v13 = vmax.f32 %v232_v12, 0.0 }
  0x8f   : > { %234 = vst [vmem:[%s208_s26] sm:$0xf] %v233_v13 }
  0x90 PF: > { %s13_s14 = sadd.s32 1, %s384_s14   ;;  %s451_s12 = smov %s380_s13 }
  0x91   : > { %p10_p5 = scmp.ge.s32.totalorder %s13_s14, 4   ;;  %s452_s13 = smov %s454_s15 }
  0x93   :  { %12 = sbr.rel (!%p10_p5) target bundleno = 2 (0x2), region = 62 }

</bundles_post_ra>
